<compile_context>
chip_gen: v7x
topology: tpu7x:2x2x1
jax: 0.10.0
libtpu: 0.0.40
codegen_flags: <defaults>
</compile_context>

<pallas_src>
import jax
import jax.numpy as jnp
from jax.experimental import pallas as pl
from jax.experimental.pallas import tpu as pltpu


def binary_classifier_kernel(x_ref, m_ref, b1_ref, w2_ref, b2_ref, out_ref):
    """One batch tile of the fully-folded forward pass.

    x_ref : (bn, C*H*W)      bf16 image tile, channel+spatial flattened (lane-dense)
    m_ref : (C*H*W, hidden)  bf16 folded {extractors + pool + Linear1} weight
    b1_ref: (1, hidden)      f32  Linear(2*feature_dim, 512) bias
    w2_ref: (hidden, 128)    f32  Linear(512, 2) weight, zero-padded to 128 cols
    b2_ref: (1, 128)         f32  Linear(512, 2) bias, zero-padded to 128 cols
    out_ref: (bn, 128)       f32  padded logits
    """
    # Extractors + global-avg-pool + first Linear, all folded into one MXU matmul.
    h = jnp.dot(x_ref[...], m_ref[...], preferred_element_type=jnp.float32)
    h = jnp.maximum(h + b1_ref[...], 0.0)          # bias + ReLU, f32 on the VPU
    # Dropout(0.5): eval-mode identity (see TODO above).
    out = jnp.dot(h, w2_ref[...], preferred_element_type=jnp.float32) + b2_ref[...]
    out_ref[...] = out.astype(out_ref.dtype)


def fold_classifier_params(params, hw, out_pad=128):
    """Fold linear extractor projections AND the average pool into the head.

    h = mean_s(x) @ (wf1@w1a + wf2@w1b) + b1
      = x_flat @ M + b1,   with M[c*HW+s, :] = (wf1@w1a + wf2@w1b)[c, :] / HW
    Also zero-pads the 2-wide output projection to `out_pad` lanes.
    TODO(synk): remove this fold when nonlinear ResNet-50 backbones land.
    """
    wf1, wf2, w1a, w1b, b1, w2, b2 = params
    m12 = jnp.dot(wf1, w1a) + jnp.dot(wf2, w1b)                 # (C, hidden) f32
    m = jnp.repeat(m12 / hw, hw, axis=0).astype(jnp.bfloat16)   # (C*HW, hidden)
    num_out = w2.shape[-1]
    pad = out_pad - num_out
    w2p = jnp.pad(w2.astype(jnp.float32), ((0, 0), (0, pad)))   # (hidden, 128)
    b2p = jnp.pad(b2.astype(jnp.float32), ((0, 0), (0, pad)))   # (1, 128)
    return m, b1.astype(jnp.float32), w2p, b2p, num_out


def binary_classifier_forward(x, params, *, block_n=512, out_pad=128):
    """x: (N, C, H, W) float32 -> logits (N, 2) float32."""
    n, c, h, w = x.shape
    hw = h * w
    k = c * hw
    # Lane-dense 2-D input slab, streamed in bf16 (HBM-bandwidth win on all gens).
    x_flat = x.reshape(n, k).astype(jnp.bfloat16)

    m, b1, w2p, b2p, num_out = fold_classifier_params(params, hw, out_pad)
    hidden = b1.shape[-1]

    bn = min(n, block_n)
    if bn == n and n >= 16:
        # Split into >=2 parallel tiles so both TensorCores are used on v7x
        # (no effect on single-TC v5e / v6e).
        half = (((n + 1) // 2) + 7) // 8 * 8
        bn = min(bn, half)
    grid = (pl.cdiv(n, bn),)

    out_padded = pl.pallas_call(
        binary_classifier_kernel,
        out_shape=jax.ShapeDtypeStruct((n, out_pad), jnp.float32),
        grid=grid,
        in_specs=[
            pl.BlockSpec((bn, k), lambda i: (i, 0)),          # batch-tiled input
            pl.BlockSpec((k, hidden), lambda i: (0, 0)),      # folded weight: constant
            pl.BlockSpec((1, hidden), lambda i: (0, 0)),      #   index_map -> stays
            pl.BlockSpec((hidden, out_pad), lambda i: (0, 0)),  # VMEM-resident across
            pl.BlockSpec((1, out_pad), lambda i: (0, 0)),     #   batch tiles
        ],
        out_specs=pl.BlockSpec((bn, out_pad), lambda i: (i, 0)),
        compiler_params=pltpu.CompilerParams(
            dimension_semantics=("parallel",),   # shard batch tiles across TCs (v7x)
        ),
    )(x_flat, m, b1, w2p, b2p)

    return out_padded[:, :num_out]


def init_params(key, in_channels, feature_dim=2048, hidden=512, num_out=2):
    """Deterministic synthetic params in the module's original shapes."""
    ks = jax.random.split(key, 6)
    scale = 0.05
    # per-extractor projection to feature_dim (stand-in for ResNet-50 features)
    wf1 = scale * jax.random.normal(ks[0], (in_channels, feature_dim), jnp.float32)
    wf2 = scale * jax.random.normal(ks[1], (in_channels, feature_dim), jnp.float32)
    # classifier: Linear(2*feature_dim, 512), split into concat-equivalent halves
    w1 = scale * jax.random.normal(ks[2], (2 * feature_dim, hidden), jnp.float32)
    w1a, w1b = w1[:feature_dim], w1[feature_dim:]
    b1 = 0.1 * jax.random.normal(ks[3], (1, hidden), jnp.float32)
    # Linear(512, 2)
    w2 = scale * jax.random.normal(ks[4], (hidden, num_out), jnp.float32)
    b2 = 0.1 * jax.random.normal(ks[5], (1, num_out), jnp.float32)
    return (wf1, wf2, w1a, w1b, b1, w2, b2)


def reference_forward(x, params):
    """Pure-JAX reference of the (unfolded) stand-in forward pass."""
    wf1, wf2, w1a, w1b, b1, w2, b2 = params
    n, c, h, w = x.shape
    pooled = x.reshape(n, c, h * w).mean(-1)
    f1 = pooled @ wf1
    f2 = pooled @ wf2
    hid = jnp.maximum(f1 @ w1a + f2 @ w1b + b1, 0.0)
    return hid @ w2 + b2


if __name__ == "__main__":
    key = jax.random.PRNGKey(0)
    k_x, k_p = jax.random.split(key)

    # small NCHW input consistent with an image-classifier forward
    N, C, H, W = 2, 3, 16, 16
    x = jax.random.normal(k_x, (N, C, H, W), jnp.float32)

    params = init_params(k_p, in_channels=C, feature_dim=2048, hidden=512, num_out=2)

    out = binary_classifier_forward(x, params)
    out = jax.block_until_ready(out)
    assert out.shape == (N, 2) and out.dtype == jnp.float32

    # folding must be numerically equivalent (to bf16 input precision)
    ref = jax.block_until_ready(reference_forward(x, params))
    assert jnp.allclose(out, ref, rtol=2e-2, atol=2e-3), (out, ref)

    print("KERNEL_OK")
</pallas_src>

<mosaic_0001>
module attributes {stable_mosaic.version = 11 : i64} {
  func.func @binary_classifier_kernel(%arg0: i32, %arg1: memref<2x768xbf16, #tpu.memory_space<vmem>>, %arg2: memref<768x512xbf16, #tpu.memory_space<vmem>>, %arg3: memref<1x512xf32, #tpu.memory_space<vmem>>, %arg4: memref<512x128xf32, #tpu.memory_space<vmem>>, %arg5: memref<1x128xf32, #tpu.memory_space<vmem>>, %arg6: memref<2x128xf32, #tpu.memory_space<vmem>>) attributes {dimension_semantics = [#tpu.dimension_semantics<parallel>], iteration_bounds = array<i64: 1>, scalar_prefetch = 0 : i64, scratch_operands = 0 : i64, tpu.core_type = #tpu.core_type<tc>, window_params = [{transform_indices = @transform_0, window_bounds = array<i64: 2, 768>}, {pipeline_mode = #tpu.pipeline_mode<synchronous>, transform_indices = @transform_1, window_bounds = array<i64: 768, 512>}, {pipeline_mode = #tpu.pipeline_mode<synchronous>, transform_indices = @transform_2, window_bounds = array<i64: 1, 512>}, {pipeline_mode = #tpu.pipeline_mode<synchronous>, transform_indices = @transform_3, window_bounds = array<i64: 512, 128>}, {pipeline_mode = #tpu.pipeline_mode<synchronous>, transform_indices = @transform_4, window_bounds = array<i64: 1, 128>}, {transform_indices = @transform_5, window_bounds = array<i64: 2, 128>}]} {
    %c0 = arith.constant 0 : index
    %c0_0 = arith.constant 0 : index
    %0 = vector.load %arg1[%c0, %c0_0] : memref<2x768xbf16, #tpu.memory_space<vmem>>, vector<2x768xbf16>
    %c0_1 = arith.constant 0 : index
    %c0_2 = arith.constant 0 : index
    %1 = vector.load %arg2[%c0_1, %c0_2] : memref<768x512xbf16, #tpu.memory_space<vmem>>, vector<768x512xbf16>
    %cst = arith.constant dense<0.000000e+00> : vector<2x512xf32>
    %2 = tpu.matmul %0, %1, %cst {dimension_numbers = #tpu.dot_dimension_numbers<[1], [0], [0], [1], [0, 0, 1, 1], [], []>} : vector<2x768xbf16>, vector<768x512xbf16>, vector<2x512xf32> -> vector<2x512xf32>
    %c0_3 = arith.constant 0 : index
    %c0_4 = arith.constant 0 : index
    %3 = vector.load %arg3[%c0_3, %c0_4] : memref<1x512xf32, #tpu.memory_space<vmem>>, vector<1x512xf32>
    %4 = vector.broadcast %3 : vector<1x512xf32> to vector<2x512xf32>
    %5 = arith.addf %2, %4 : vector<2x512xf32>
    %cst_5 = arith.constant 0.000000e+00 : f32
    %6 = vector.broadcast %cst_5 : f32 to vector<2x512xf32>
    %7 = arith.maximumf %5, %6 : vector<2x512xf32>
    %c0_6 = arith.constant 0 : index
    %c0_7 = arith.constant 0 : index
    %8 = vector.load %arg4[%c0_6, %c0_7] : memref<512x128xf32, #tpu.memory_space<vmem>>, vector<512x128xf32>
    %cst_8 = arith.constant dense<0.000000e+00> : vector<2x128xf32>
    %9 = tpu.matmul %7, %8, %cst_8 {dimension_numbers = #tpu.dot_dimension_numbers<[1], [0], [0], [1], [0, 0, 1, 1], [], []>} : vector<2x512xf32>, vector<512x128xf32>, vector<2x128xf32> -> vector<2x128xf32>
    %c0_9 = arith.constant 0 : index
    %c0_10 = arith.constant 0 : index
    %10 = vector.load %arg5[%c0_9, %c0_10] : memref<1x128xf32, #tpu.memory_space<vmem>>, vector<1x128xf32>
    %11 = vector.broadcast %10 : vector<1x128xf32> to vector<2x128xf32>
    %12 = arith.addf %9, %11 : vector<2x128xf32>
    %c0_11 = arith.constant 0 : index
    %c0_12 = arith.constant 0 : index
    %13 = vector.load %arg6[%c0_11, %c0_12] : memref<2x128xf32, #tpu.memory_space<vmem>>, vector<2x128xf32>
    tpu.vector_store %arg6[%c0_11, %c0_12], %12 {strides = array<i32>} : memref<2x128xf32, #tpu.memory_space<vmem>>, vector<2x128xf32>,
    return
  }
  func.func @transform_0(%arg0: i32) -> (i32, i32) {
    %c0_i32 = arith.constant 0 : i32
    %c0_i32_0 = arith.constant 0 : i32
    return %arg0, %c0_i32 : i32, i32
  }
  func.func @transform_1(%arg0: i32) -> (i32, i32) {
    %c0_i32 = arith.constant 0 : i32
    %c0_i32_0 = arith.constant 0 : i32
    %c0_i32_1 = arith.constant 0 : i32
    return %c0_i32, %c0_i32_0 : i32, i32
  }
  func.func @transform_2(%arg0: i32) -> (i32, i32) {
    %c0_i32 = arith.constant 0 : i32
    %c0_i32_0 = arith.constant 0 : i32
    %c0_i32_1 = arith.constant 0 : i32
    return %c0_i32, %c0_i32_0 : i32, i32
  }
  func.func @transform_3(%arg0: i32) -> (i32, i32) {
    %c0_i32 = arith.constant 0 : i32
    %c0_i32_0 = arith.constant 0 : i32
    %c0_i32_1 = arith.constant 0 : i32
    return %c0_i32, %c0_i32_0 : i32, i32
  }
  func.func @transform_4(%arg0: i32) -> (i32, i32) {
    %c0_i32 = arith.constant 0 : i32
    %c0_i32_0 = arith.constant 0 : i32
    %c0_i32_1 = arith.constant 0 : i32
    return %c0_i32, %c0_i32_0 : i32, i32
  }
  func.func @transform_5(%arg0: i32) -> (i32, i32) {
    %c0_i32 = arith.constant 0 : i32
    %c0_i32_0 = arith.constant 0 : i32
    return %arg0, %c0_i32 : i32, i32
  }
}

</mosaic_0001>

<bundles_post_ra>
// kernel: tpu_custom_call.1
= control target key start
LH: loop header
LB: loop body
LE: loop exit
PB: predicated region body
PF: predicated region fallthrough
CT: control target
= control target key end

     0   :  { %10 = vsyncpa [#allocation3], 0  ;;  %s2620_s0 = inlined_call_operand.hbm [shape: bf16[2,768], index: 0, kind: input, shape index: {}]   ;;  %s2621_s1 = inlined_call_operand.hbm [shape: bf16[768,512], index: 1, kind: input, shape index: {}]   ;;  %s2622_s2 = inlined_call_operand.vmem [shape: f32[1,512], index: 2, kind: input, shape index: {}]   ;;  %s2623_s3 = inlined_call_operand.hbm [shape: f32[512,128], index: 3, kind: input, shape index: {}]   ;;  %s2624_s4 = inlined_call_operand.vmem [shape: f32[1,128], index: 4, kind: input, shape index: {}]   ;;  %s2625_s5 = inlined_call_operand.hbm [shape: f32[2,128], index: 5, kind: output, shape index: {}]  }
   0x1   :  { %11 = vsyncpa [#allocation6], 0 }
   0x2   :  { %12 = vsyncpa [#allocation4], 0  ;;  %s2506_s18 = smov [#allocation5]   ;;  %s2412_s22 = scalar_lea.hbm %s2621_s1, 24576 }
   0x3   :  { %s28_s19 = sshll.u32 %s2506_s18, 4  ;;  %p2413_p0 = scmp.ne.s32.totalorder %s2621_s1, %s2412_s22  ;;  %s29_s19 = int_to_ptr.vmem [resolvable:$true] %s28_s19 }
   0x4   :  { %p2416_p1 = scmp.lt.u32.totalorder %s2412_s22, %s2621_s1 }
   0x6   :  { %p2418_p2 = pnand %p2416_p1, %p2413_p0 }
   0x8   :  { %2421 = shalt.err (!%p2418_p2)
}
   0x9   :  { %s2422_s27 = scalar_lea.vmem %s29_s19, 24576  ;;  %p2427_p4 = scmp.lt.s32.totalorder %s29_s19, %s29_s19 }
   0xa   :  { %p2423_p3 = scmp.ne.s32.totalorder %s29_s19, %s2422_s27  ;;  %p2428_p5 = scmp.lt.s32.totalorder %s2422_s27, %s2422_s27 }
   0xc   :  { %p2429_p6 = por %p2428_p5, %p2427_p4 }
   0xe   :  { %p2430_p7 = pnand %p2429_p6, %p2423_p3 }
  0x10   :  { %2433 = shalt.err (!%p2430_p7)
}
  0x11   :  { %s2507_s28 = smov 256   ;;  %s2508_s29 = smov 16  }
  0x12   :  { %34 = dma.hbm_to_vmem [thread:$0]  %s2621_s1, 24576, %s29_s19, [#allocation6], %s2507_s28, %s2507_s28, %s2508_s29  }
  0x13   :  { %s2509_s7 = smov [#allocation2]   ;;  %s2510_s9 = smov [#allocation7]  }
  0x14   :  { %s19_s8 = sshll.u32 %s2509_s7, 4  ;;  %s42_s10 = sshll.u32 %s2510_s9, 4  ;;  %s20_s8 = int_to_ptr.vmem [resolvable:$true] %s19_s8  ;;  %s43_s10 = int_to_ptr.vmem [resolvable:$true] %s42_s10 }
  0x15   :  { %s2434_s13 = scalar_lea.hbm %s2620_s0, 96 }
  0x16   :  { %p2435_p8 = scmp.ne.s32.totalorder %s2620_s0, %s2434_s13  ;;  %p2438_p9 = scmp.lt.u32.totalorder %s2434_s13, %s2620_s0 }
  0x18   :  { %p2440_p10 = pnand %p2438_p9, %p2435_p8 }
  0x1a   :  { %2443 = shalt.err (!%p2440_p10)
}
  0x1b   :  { %s2444_s1 = scalar_lea.vmem %s20_s8, 96  ;;  %p2449_p12 = scmp.lt.s32.totalorder %s20_s8, %s20_s8 }
  0x1c   :  { %p2445_p11 = scmp.ne.s32.totalorder %s20_s8, %s2444_s1  ;;  %p2450_p13 = scmp.lt.s32.totalorder %s2444_s1, %s2444_s1 }
  0x1e   :  { %p2451_p0 = por %p2450_p13, %p2449_p12 }
  0x20   :  { %p2452_p1 = pnand %p2451_p0, %p2445_p11 }
  0x22   :  { %2455 = shalt.err (!%p2452_p1)
}
  0x23   :  { %22 = dma.hbm_to_vmem [thread:$0]  %s2620_s0, 96, %s20_s8, [#allocation3]  }
  0x24   :  { %s2456_s22 = scalar_lea.hbm %s2623_s3, 8192 }
  0x25   :  { %p2457_p2 = scmp.ne.s32.totalorder %s2623_s3, %s2456_s22  ;;  %p2460_p3 = scmp.lt.u32.totalorder %s2456_s22, %s2623_s3 }
  0x27   :  { %p2462_p4 = pnand %p2460_p3, %p2457_p2 }
  0x29   :  { %2465 = shalt.err (!%p2462_p4)
}
  0x2a   :  { %s2466_s27 = scalar_lea.vmem %s43_s10, 8192  ;;  %p2471_p6 = scmp.lt.s32.totalorder %s43_s10, %s43_s10 }
  0x2b   :  { %p2467_p5 = scmp.ne.s32.totalorder %s43_s10, %s2466_s27  ;;  %p2472_p7 = scmp.lt.s32.totalorder %s2466_s27, %s2466_s27 }
  0x2d   :  { %p2473_p8 = por %p2472_p7, %p2471_p6 }
  0x2f   :  { %p2474_p9 = pnand %p2473_p8, %p2467_p5 }
  0x31   :  { %2477 = shalt.err (!%p2474_p9)
}
  0x32   :  { %s2511_s0 = smov 128   ;;  %s2512_s28 = smov 8  }
  0x33   :  { %48 = dma.hbm_to_vmem [thread:$0]  %s2623_s3, 8192, %s43_s10, [#allocation6], %s2511_s0, %s2511_s0, %s2512_s28  }
  0x34   :  { %2500 = dma.done.wait [#allocation3], 96  }
  0x35   :  { %2501 = vsyncadd [#allocation3], 4294967200 }
  0x36   :  { %2502 = dma.done.wait [#allocation6], 32768  }
  0x37   :  { %2503 = vsyncadd [#allocation6], 4294934528  ;;  %v2123_v0 = vld [vmem:[#allocation5 + $0x4] ss:$16 sps:$4 sm:$0xff]   ;;  %v2125_v1 = vld [vmem:[#allocation5 + $0xc] ss:$16 sps:$4 sm:$0xff]   ;;  %v255_v36 = vlaneseq }
  0x38   :  { %1289 = vmatprep.subr.bf16.mxu0 %v2123_v0  ;;  %v2127_v2 = vld [vmem:[#allocation5] ss:$16 sps:$4 sm:$0xff]   ;;  %v2128_v3 = vld [vmem:[#allocation5 + $0x8] ss:$16 sps:$4 sm:$0xff]   ;;  %1412 = vmatprep.subr.bf16.mxu1 %v2125_v1  ;;  %v2129_v4 = vld [vmem:[#allocation5 + $0x24] ss:$16 sps:$4 sm:$0xff]  }
  0x39   :  { %1290 = vmatpush1.bf16.msra.mxu0 %v2127_v2  ;;  %1413 = vmatpush1.bf16.msra.mxu1 %v2128_v3  ;;  %v2131_v5 = vld [vmem:[#allocation5 + $0x2c] ss:$16 sps:$4 sm:$0xff]   ;;  %v2133_v6 = vld [vmem:[#allocation5 + $0x20] ss:$16 sps:$4 sm:$0xff]   ;;  %v2134_v7 = vld [vmem:[#allocation5 + $0x28] ss:$16 sps:$4 sm:$0xff]  }
  0x3a   :  { %1291 = vmatprep.subr.bf16.mxu0 %v2129_v4  ;;  %1414 = vmatprep.subr.bf16.mxu1 %v2131_v5  ;;  %v2135_v8 = vld [vmem:[#allocation5 + $0x44] ss:$16 sps:$4 sm:$0xff]   ;;  %v2137_v9 = vld [vmem:[#allocation5 + $0x4c] ss:$16 sps:$4 sm:$0xff]   ;;  %v2139_v10 = vld [vmem:[#allocation5 + $0x40] ss:$16 sps:$4 sm:$0xff]  }
  0x3b   :  { %v2140_v11 = vld [vmem:[#allocation5 + $0x48] ss:$16 sps:$4 sm:$0xff]   ;;  %v2141_v12 = vld [vmem:[#allocation5 + $0x64] ss:$16 sps:$4 sm:$0xff]   ;;  %v2143_v13 = vld [vmem:[#allocation5 + $0x6c] ss:$16 sps:$4 sm:$0xff]  }
  0x3c   :  { %v2145_v14 = vld [vmem:[#allocation5 + $0x60] ss:$16 sps:$4 sm:$0xff]   ;;  %v2146_v15 = vld [vmem:[#allocation5 + $0x68] ss:$16 sps:$4 sm:$0xff]   ;;  %v2147_v16 = vld [vmem:[#allocation5 + $0x84] ss:$16 sps:$4 sm:$0xff]  }
  0x3d   :  { %1292 = vmatpush1.bf16.msra.mxu0 %v2133_v6  ;;  %1415 = vmatpush1.bf16.msra.mxu1 %v2134_v7  ;;  %v2149_v17 = vld [vmem:[#allocation5 + $0x8c] ss:$16 sps:$4 sm:$0xff]   ;;  %v2151_v18 = vld [vmem:[#allocation5 + $0x80] ss:$16 sps:$4 sm:$0xff]   ;;  %v2152_v19 = vld [vmem:[#allocation5 + $0x88] ss:$16 sps:$4 sm:$0xff]  }
  0x3e   :  { %1293 = vmatprep.subr.bf16.mxu0 %v2135_v8  ;;  %1416 = vmatprep.subr.bf16.mxu1 %v2137_v9  ;;  %v2153_v20 = vld [vmem:[#allocation5 + $0xa4] ss:$16 sps:$4 sm:$0xff]   ;;  %v2155_v21 = vld [vmem:[#allocation5 + $0xac] ss:$16 sps:$4 sm:$0xff]   ;;  %v2157_v22 = vld [vmem:[#allocation5 + $0xa0] ss:$16 sps:$4 sm:$0xff]  }
  0x3f   :  { %v2158_v23 = vld [vmem:[#allocation5 + $0xa8] ss:$16 sps:$4 sm:$0xff]   ;;  %v2159_v24 = vld [vmem:[#allocation5 + $0xc4] ss:$16 sps:$4 sm:$0xff]   ;;  %v2161_v25 = vld [vmem:[#allocation5 + $0xcc] ss:$16 sps:$4 sm:$0xff]  }
  0x40   :  { %v2163_v26 = vld [vmem:[#allocation5 + $0xc0] ss:$16 sps:$4 sm:$0xff]   ;;  %v2164_v27 = vld [vmem:[#allocation5 + $0xc8] ss:$16 sps:$4 sm:$0xff]   ;;  %v2165_v28 = vld [vmem:[#allocation5 + $0xe4] ss:$16 sps:$4 sm:$0xff]  }
  0x41   :  { %1294 = vmatpush1.bf16.msra.mxu0 %v2139_v10  ;;  %1417 = vmatpush1.bf16.msra.mxu1 %v2140_v11  ;;  %v2167_v29 = vld [vmem:[#allocation5 + $0xec] ss:$16 sps:$4 sm:$0xff]   ;;  %v2169_v30 = vld [vmem:[#allocation5 + $0xe0] ss:$16 sps:$4 sm:$0xff]   ;;  %v2170_v31 = vld [vmem:[#allocation5 + $0xe8] ss:$16 sps:$4 sm:$0xff]  }
  0x42   :  { %1295 = vmatprep.subr.bf16.mxu0 %v2141_v12  ;;  %1418 = vmatprep.subr.bf16.mxu1 %v2143_v13  ;;  %v2171_v32 = vld [vmem:[#allocation5 + $0x104] ss:$16 sps:$4 sm:$0xff]   ;;  %v2173_v33 = vld [vmem:[#allocation5 + $0x10c] ss:$16 sps:$4 sm:$0xff]   ;;  %v2175_v34 = vld [vmem:[#allocation5 + $0x100] ss:$16 sps:$4 sm:$0xff]  }
  0x43   :  { %v2176_v35 = vld [vmem:[#allocation5 + $0x108] ss:$16 sps:$4 sm:$0xff]   ;;  %v2513_v37 = vmov 1966171168   ;;  %v2177_v39 = vld [vmem:[#allocation5 + $0x124] ss:$16 sps:$4 sm:$0xff]  }
  0x44   :  { %v278_v38 = vunpack.c.l.s4 %v2513_v37  ;;  %v2179_v40 = vld [vmem:[#allocation5 + $0x12c] ss:$16 sps:$4 sm:$0xff]   ;;  %v2181_v41 = vld [vmem:[#allocation5 + $0x120] ss:$16 sps:$4 sm:$0xff]   ;;  %v2581_v42 = vshrl.u32 %v255_v36, 7  ;;  %s2514_s8 = smov [#allocation8]  }
  0x45   :  { %1296 = vmatpush1.bf16.msra.mxu0 %v2145_v14  ;;  %1419 = vmatpush1.bf16.msra.mxu1 %v2146_v15  ;;  %v2182_v44 = vld [vmem:[#allocation5 + $0x128] ss:$16 sps:$4 sm:$0xff]   ;;  %v2183_v45 = vld [vmem:[#allocation5 + $0x144] ss:$16 sps:$4 sm:$0xff]   ;;  %v2185_v46 = vld [vmem:[#allocation5 + $0x14c] ss:$16 sps:$4 sm:$0xff]  }
  0x46   :  { %1297 = vmatprep.subr.bf16.mxu0 %v2147_v16  ;;  %1420 = vmatprep.subr.bf16.mxu1 %v2149_v17  ;;  %v279_v43 = vunpack.c.0.s8 %v278_v38  ;;  %v2187_v47 = vld [vmem:[#allocation5 + $0x140] ss:$16 sps:$4 sm:$0xff]   ;;  %v2188_v48 = vld [vmem:[#allocation5 + $0x148] ss:$16 sps:$4 sm:$0xff]   ;;  %v2189_v50 = vld [vmem:[#allocation5 + $0x164] ss:$16 sps:$4 sm:$0xff]  }
  0x47   :  { %v2191_v51 = vld [vmem:[#allocation5 + $0x16c] ss:$16 sps:$4 sm:$0xff]   ;;  %v2193_v53 = vld [vmem:[#allocation5 + $0x160] ss:$16 sps:$4 sm:$0xff]   ;;  %v2194_v55 = vld [vmem:[#allocation5 + $0x168] ss:$16 sps:$4 sm:$0xff]  }
  0x48   :  { %v282_v49 = vsub.s32 %v279_v43, %v2581_v42  ;;  %v60_v52 = vld [vmem:[#allocation2] sm:$0x3f]  ;;  %v2195_v56 = vld [vmem:[#allocation5 + $0x184] ss:$16 sps:$4 sm:$0xff]   ;;  %v2199_v59 = vld [vmem:[#allocation5 + $0x180] ss:$16 sps:$4 sm:$0xff]  }
  0x49   :  { %1298 = vmatpush1.bf16.msra.mxu0 %v2151_v18  ;;  %1421 = vmatpush1.bf16.msra.mxu1 %v2152_v19  ;;  %v2197_v57 = vld [vmem:[#allocation5 + $0x18c] ss:$16 sps:$4 sm:$0xff]   ;;  %v2200_v61 = vld [vmem:[#allocation5 + $0x188] ss:$16 sps:$4 sm:$0xff]   ;;  %v2201_v62 = vld [vmem:[#allocation5 + $0x1a4] ss:$16 sps:$4 sm:$0xff]   ;;  %v276_v8 = vcombine.high %v60_v52, %v60_v52 }
  0x4a   :  { %1299 = vmatprep.subr.bf16.mxu0 %v2153_v20  ;;  %1422 = vmatprep.subr.bf16.mxu1 %v2155_v21  ;;  %v283_v54 = vrot.slane %v60_v52, %v282_v49  ;;  %v2203_v63 = vld [vmem:[#allocation5 + $0x1ac] ss:$16 sps:$4 sm:$0xff]   ;;  %v2205_v0 = vld [vmem:[#allocation5 + $0x1a0] ss:$16 sps:$4 sm:$0xff]   ;;  %v2206_v1 = vld [vmem:[#allocation5 + $0x1a8] ss:$16 sps:$4 sm:$0xff]  }
  0x4b   :  { %v2207_v2 = vld [vmem:[#allocation5 + $0x1c4] ss:$16 sps:$4 sm:$0xff]   ;;  %v2209_v3 = vld [vmem:[#allocation5 + $0x1cc] ss:$16 sps:$4 sm:$0xff]   ;;  %v2211_v4 = vld [vmem:[#allocation5 + $0x1c0] ss:$16 sps:$4 sm:$0xff]   ;;  %v290_v11 = vrot.slane %v276_v8, %v282_v49 }
  0x4c   :  { %v291_v58 = vcombine.high %v283_v54, %v283_v54  ;;  %v2212_v5 = vld [vmem:[#allocation5 + $0x1c8] ss:$16 sps:$4 sm:$0xff]   ;;  %v2213_v6 = vld [vmem:[#allocation5 + $0x1e4] ss:$16 sps:$4 sm:$0xff]   ;;  %v2215_v7 = vld [vmem:[#allocation5 + $0x1ec] ss:$16 sps:$4 sm:$0xff]   ;;  %v2584_v16 = vrot.slane %v283_v54, %v282_v49 }
  0x4d   :  { %1300 = vmatpush1.bf16.msra.mxu0 %v2157_v22  ;;  %1423 = vmatpush1.bf16.msra.mxu1 %v2158_v23  ;;  %v2217_v9 = vld [vmem:[#allocation5 + $0x1e0] ss:$16 sps:$4 sm:$0xff]   ;;  %v2218_v10 = vld [vmem:[#allocation5 + $0x1e8] ss:$16 sps:$4 sm:$0xff]   ;;  %v2221_v12 = vld [vmem:[#allocation5 + $0x204] ss:$16 sps:$4 sm:$0xff]   ;;  %v292_v14 = vcombine.high %v290_v11, %v290_v11  ;;  %v2588_v19 = vrot.slane %v290_v11, %v282_v49 }
  0x4e   :  { %1301 = vmatprep.subr.bf16.mxu0 %v2159_v24  ;;  %1424 = vmatprep.subr.bf16.mxu1 %v2161_v25  ;;  %v313_v60 = vrot.slane %v291_v58, %v282_v49  ;;  %v2224_v13 = vld [vmem:[#allocation5 + $0x20c] ss:$16 sps:$4 sm:$0xff]   ;;  %v2219_v15 = vld [vmem:[#allocation5 + $0x200] ss:$16 sps:$4 sm:$0xff]   ;;  %v2222_v17 = vld [vmem:[#allocation5 + $0x208] ss:$16 sps:$4 sm:$0xff]  }
  0x4f   :  { %v2586_v18 = vrot.slane %v292_v14, %v282_v49  ;;  %v2227_v20 = vld [vmem:[#allocation5 + $0x224] ss:$16 sps:$4 sm:$0xff]   ;;  %v2230_v21 = vld [vmem:[#allocation5 + $0x22c] ss:$16 sps:$4 sm:$0xff]   ;;  %v2225_v23 = vld [vmem:[#allocation5 + $0x220] ss:$16 sps:$4 sm:$0xff]  }
  0x50   :  { %1321 = vmatprep.mubr.bf16.mxu0 %v313_v60  ;;  %1444 = vmatprep.mubr.bf16.mxu1 %v313_v60  ;;  %v322_v22 = vcombine.high %v313_v60, %v313_v60  ;;  %v2228_v24 = vld [vmem:[#allocation5 + $0x228] ss:$16 sps:$4 sm:$0xff]   ;;  %v2233_v25 = vld [vmem:[#allocation5 + $0x244] ss:$16 sps:$4 sm:$0xff]   ;;  %v2254_v38 = vld [vmem:[#allocation5 + $0x2ac] ss:$16 sps:$4 sm:$0xff]  }
  0x51   :  { %1302 = vmatpush1.bf16.msra.mxu0 %v2163_v26  ;;  %1425 = vmatpush1.bf16.msra.mxu1 %v2164_v27  ;;  %v2236_v26 = vld [vmem:[#allocation5 + $0x24c] ss:$16 sps:$4 sm:$0xff]   ;;  %v2231_v27 = vld [vmem:[#allocation5 + $0x240] ss:$16 sps:$4 sm:$0xff]   ;;  %v2246_v36 = vld [vmem:[#allocation5 + $0x288] ss:$16 sps:$4 sm:$0xff]  }
  0x52   :  { %1303 = vmatprep.subr.bf16.mxu0 %v2165_v28  ;;  %1426 = vmatprep.subr.bf16.mxu1 %v2167_v29  ;;  %v2234_v28 = vld [vmem:[#allocation5 + $0x248] ss:$16 sps:$4 sm:$0xff]   ;;  %v2239_v29 = vld [vmem:[#allocation5 + $0x264] ss:$16 sps:$4 sm:$0xff]   ;;  %v2260_v43 = vld [vmem:[#allocation5 + $0x2cc] ss:$16 sps:$4 sm:$0xff]  }
  0x53   :  { %v2251_v37 = vld [vmem:[#allocation5 + $0x2a4] ss:$16 sps:$4 sm:$0xff]   ;;  %v2264_v49 = vld [vmem:[#allocation5 + $0x2e8] ss:$16 sps:$4 sm:$0xff]   ;;  %v2267_v52 = vld [vmem:[#allocation5 + $0x300] ss:$16 sps:$4 sm:$0xff]  }
  0x54   :  { %v2275_v54 = vld [vmem:[#allocation5 + $0x324] ss:$16 sps:$4 sm:$0xff]   ;;  %v2279_v60 = vld [vmem:[#allocation5 + $0x340] ss:$16 sps:$4 sm:$0xff]   ;;  %v2308_v11 = vld [vmem:[#allocation5 + $0x3cc] ss:$16 sps:$4 sm:$0xff]  }
  0x55   :  { %1304 = vmatpush1.bf16.msra.mxu0 %v2169_v30  ;;  %1427 = vmatpush1.bf16.msra.mxu1 %v2170_v31  ;;  %v2242_v30 = vld [vmem:[#allocation5 + $0x26c] ss:$16 sps:$4 sm:$0xff]   ;;  %v2237_v31 = vld [vmem:[#allocation5 + $0x260] ss:$16 sps:$4 sm:$0xff]   ;;  %v2281_v58 = vld [vmem:[#allocation5 + $0x344] ss:$16 sps:$4 sm:$0xff]  }
  0x56   :  { %1305 = vmatprep.subr.bf16.mxu0 %v2171_v32  ;;  %1428 = vmatprep.subr.bf16.mxu1 %v2173_v33  ;;  %v2240_v32 = vld [vmem:[#allocation5 + $0x268] ss:$16 sps:$4 sm:$0xff]   ;;  %v2245_v33 = vld [vmem:[#allocation5 + $0x284] ss:$16 sps:$4 sm:$0xff]   ;;  %v2297_v8 = vld [vmem:[#allocation5 + $0x3a0] ss:$16 sps:$4 sm:$0xff]  }
  0x57   :  { %v2311_v14 = vld [vmem:[#allocation5 + $0x3e4] ss:$16 sps:$4 sm:$0xff]   ;;  %s1757_s9 = sshll.u32 %s2514_s8, 4  ;;  %s1758_s9 = int_to_ptr.vmem [resolvable:$true] %s1757_s9 }
  0x58   :  { %s2478_s10 = scalar_lea.vmem %s1758_s9, 32  ;;  %p2483_p11 = scmp.lt.s32.totalorder %s1758_s9, %s1758_s9 }
  0x59   :  { %1306 = vmatpush1.bf16.msra.mxu0 %v2175_v34  ;;  %1429 = vmatpush1.bf16.msra.mxu1 %v2176_v35  ;;  %v2248_v34 = vld [vmem:[#allocation5 + $0x28c] ss:$16 sps:$4 sm:$0xff]   ;;  %v2243_v35 = vld [vmem:[#allocation5 + $0x280] ss:$16 sps:$4 sm:$0xff]   ;;  %p2479_p10 = scmp.ne.s32.totalorder %s1758_s9, %s2478_s10  ;;  %p2484_p12 = scmp.lt.s32.totalorder %s2478_s10, %s2478_s10 }
  0x5a   :  { %1307 = vmatprep.subr.bf16.mxu0 %v2177_v39  ;;  %1430 = vmatprep.subr.bf16.mxu1 %v2179_v40  ;;  %v2249_v39 = vld [vmem:[#allocation5 + $0x2a0] ss:$16 sps:$4 sm:$0xff]   ;;  %v2252_v40 = vld [vmem:[#allocation5 + $0x2a8] ss:$16 sps:$4 sm:$0xff]  }
  0x5b   :  { %p2485_p13 = por %p2484_p12, %p2483_p11 }
  0x5d   :  { %1308 = vmatpush1.bf16.msra.mxu0 %v2181_v41  ;;  %1431 = vmatpush1.bf16.msra.mxu1 %v2182_v44  ;;  %v2257_v41 = vld [vmem:[#allocation5 + $0x2c4] ss:$16 sps:$4 sm:$0xff]   ;;  %v2255_v44 = vld [vmem:[#allocation5 + $0x2c0] ss:$16 sps:$4 sm:$0xff]   ;;  %p2486_p0 = pnand %p2485_p13, %p2479_p10 }
  0x5e   :  { %1309 = vmatprep.subr.bf16.mxu0 %v2183_v45  ;;  %1432 = vmatprep.subr.bf16.mxu1 %v2185_v46  ;;  %v2258_v45 = vld [vmem:[#allocation5 + $0x2c8] ss:$16 sps:$4 sm:$0xff]   ;;  %v2263_v46 = vld [vmem:[#allocation5 + $0x2e4] ss:$16 sps:$4 sm:$0xff]  }
  0x61   :  { %1310 = vmatpush1.bf16.msra.mxu0 %v2187_v47  ;;  %1433 = vmatpush1.bf16.msra.mxu1 %v2188_v48  ;;  %v2266_v47 = vld [vmem:[#allocation5 + $0x2ec] ss:$16 sps:$4 sm:$0xff]   ;;  %v2261_v48 = vld [vmem:[#allocation5 + $0x2e0] ss:$16 sps:$4 sm:$0xff]  }
  0x62   :  { %1311 = vmatprep.subr.bf16.mxu0 %v2189_v50  ;;  %1434 = vmatprep.subr.bf16.mxu1 %v2191_v51  ;;  %v2269_v50 = vld [vmem:[#allocation5 + $0x304] ss:$16 sps:$4 sm:$0xff]   ;;  %v2272_v51 = vld [vmem:[#allocation5 + $0x30c] ss:$16 sps:$4 sm:$0xff]  }
  0x65   :  { %1312 = vmatpush1.bf16.msra.mxu0 %v2193_v53  ;;  %1435 = vmatpush1.bf16.msra.mxu1 %v2194_v55  ;;  %v2270_v53 = vld [vmem:[#allocation5 + $0x308] ss:$16 sps:$4 sm:$0xff]   ;;  %v2278_v55 = vld [vmem:[#allocation5 + $0x32c] ss:$16 sps:$4 sm:$0xff]  }
  0x66   :  { %1313 = vmatprep.subr.bf16.mxu0 %v2195_v56  ;;  %1436 = vmatprep.subr.bf16.mxu1 %v2197_v57  ;;  %v2273_v56 = vld [vmem:[#allocation5 + $0x320] ss:$16 sps:$4 sm:$0xff]   ;;  %v2276_v57 = vld [vmem:[#allocation5 + $0x328] ss:$16 sps:$4 sm:$0xff]  }
  0x69   :  { %1314 = vmatpush1.bf16.msra.mxu0 %v2199_v59  ;;  %1437 = vmatpush1.bf16.msra.mxu1 %v2200_v61  ;;  %v2284_v59 = vld [vmem:[#allocation5 + $0x34c] ss:$16 sps:$4 sm:$0xff]   ;;  %v2282_v61 = vld [vmem:[#allocation5 + $0x348] ss:$16 sps:$4 sm:$0xff]  }
  0x6a   :  { %1315 = vmatprep.subr.bf16.mxu0 %v2201_v62  ;;  %1438 = vmatprep.subr.bf16.mxu1 %v2203_v63  ;;  %v2287_v62 = vld [vmem:[#allocation5 + $0x364] ss:$16 sps:$4 sm:$0xff]   ;;  %v2290_v63 = vld [vmem:[#allocation5 + $0x36c] ss:$16 sps:$4 sm:$0xff]  }
  0x6d   :  { %1316 = vmatpush1.bf16.msra.mxu0 %v2205_v0  ;;  %1439 = vmatpush1.bf16.msra.mxu1 %v2206_v1  ;;  %v2285_v0 = vld [vmem:[#allocation5 + $0x360] ss:$16 sps:$4 sm:$0xff]   ;;  %v2288_v1 = vld [vmem:[#allocation5 + $0x368] ss:$16 sps:$4 sm:$0xff]  }
  0x6e   :  { %1317 = vmatprep.subr.bf16.mxu0 %v2207_v2  ;;  %1440 = vmatprep.subr.bf16.mxu1 %v2209_v3  ;;  %v2293_v2 = vld [vmem:[#allocation5 + $0x384] ss:$16 sps:$4 sm:$0xff]   ;;  %v2296_v3 = vld [vmem:[#allocation5 + $0x38c] ss:$16 sps:$4 sm:$0xff]  }
  0x71   :  { %1318 = vmatpush1.bf16.msra.mxu0 %v2211_v4  ;;  %1441 = vmatpush1.bf16.msra.mxu1 %v2212_v5  ;;  %v2291_v4 = vld [vmem:[#allocation5 + $0x380] ss:$16 sps:$4 sm:$0xff]   ;;  %v2294_v5 = vld [vmem:[#allocation5 + $0x388] ss:$16 sps:$4 sm:$0xff]  }
  0x72   :  { %1319 = vmatprep.subr.bf16.mxu0 %v2213_v6  ;;  %1442 = vmatprep.subr.bf16.mxu1 %v2215_v7  ;;  %v2299_v6 = vld [vmem:[#allocation5 + $0x3a4] ss:$16 sps:$4 sm:$0xff]   ;;  %v2302_v7 = vld [vmem:[#allocation5 + $0x3ac] ss:$16 sps:$4 sm:$0xff]  }
  0x75   :  { %1320 = vmatpush1.bf16.msra.mxu0 %v2217_v9  ;;  %1443 = vmatpush1.bf16.msra.mxu1 %v2218_v10  ;;  %v2300_v9 = vld [vmem:[#allocation5 + $0x3a8] ss:$16 sps:$4 sm:$0xff]   ;;  %v2305_v10 = vld [vmem:[#allocation5 + $0x3c4] ss:$16 sps:$4 sm:$0xff]  }
  0x76   :  { %1330 = vmatprep.subr.bf16.mxu0 %v2221_v12  ;;  %1453 = vmatprep.subr.bf16.mxu1 %v2224_v13  ;;  %v2303_v12 = vld [vmem:[#allocation5 + $0x3c0] ss:$16 sps:$4 sm:$0xff]   ;;  %v2306_v13 = vld [vmem:[#allocation5 + $0x3c8] ss:$16 sps:$4 sm:$0xff]  }
  0x78   :  { %1322 = vmatmul.mubr.bf16.vlgmr.msra.gmra.mrb[0].mxu0 %v2584_v16  ;;  %1445 = vmatmul.mubr.bf16.vlgmr.msra.gmra.mrb[0].mxu1 %v2584_v16 }
  0x79   :  { %1331 = vmatpush1.bf16.msra.mxu0 %v2219_v15  ;;  %1454 = vmatpush1.bf16.msra.mxu1 %v2222_v17  ;;  %v2314_v15 = vld [vmem:[#allocation5 + $0x3ec] ss:$16 sps:$4 sm:$0xff]   ;;  %v2309_v17 = vld [vmem:[#allocation5 + $0x3e0] ss:$16 sps:$4 sm:$0xff]  }
  0x7a   :  { %1332 = vmatprep.subr.bf16.mxu0 %v2227_v20  ;;  %1455 = vmatprep.subr.bf16.mxu1 %v2230_v21  ;;  %v2312_v20 = vld [vmem:[#allocation5 + $0x3e8] ss:$16 sps:$4 sm:$0xff]   ;;  %v2317_v21 = vld [vmem:[#allocation5 + $0x404] ss:$16 sps:$4 sm:$0xff]  }
  0x7b   :  { %1362 = vmatprep.mubr.bf16.mxu0 %v322_v22  ;;  %1485 = vmatprep.mubr.bf16.mxu1 %v322_v22  ;;  %v2320_v22 = vld [vmem:[#allocation5 + $0x40c] ss:$16 sps:$4 sm:$0xff]  }
  0x7d   :  { %1333 = vmatpush1.bf16.msra.mxu0 %v2225_v23  ;;  %1456 = vmatpush1.bf16.msra.mxu1 %v2228_v24  ;;  %v321_v23 = vcombine.high %v2584_v16, %v2584_v16  ;;  %v2315_v24 = vld [vmem:[#allocation5 + $0x400] ss:$16 sps:$4 sm:$0xff]  }
  0x7e   :  { %1334 = vmatprep.subr.bf16.mxu0 %v2233_v25  ;;  %1457 = vmatprep.subr.bf16.mxu1 %v2236_v26  ;;  %v2318_v25 = vld [vmem:[#allocation5 + $0x408] ss:$16 sps:$4 sm:$0xff]   ;;  %v2323_v26 = vld [vmem:[#allocation5 + $0x424] ss:$16 sps:$4 sm:$0xff]   ;;  %v2327_v16 = vld [vmem:[#allocation5 + $0x440] ss:$16 sps:$4 sm:$0xff]  }
  0x81   :  { %1335 = vmatpush1.bf16.msra.mxu0 %v2231_v27  ;;  %1458 = vmatpush1.bf16.msra.mxu1 %v2234_v28  ;;  %v2326_v27 = vld [vmem:[#allocation5 + $0x42c] ss:$16 sps:$4 sm:$0xff]   ;;  %v2321_v28 = vld [vmem:[#allocation5 + $0x420] ss:$16 sps:$4 sm:$0xff]  }
  0x82   :  { %1336 = vmatprep.subr.bf16.mxu0 %v2239_v29  ;;  %1459 = vmatprep.subr.bf16.mxu1 %v2242_v30  ;;  %v2324_v29 = vld [vmem:[#allocation5 + $0x428] ss:$16 sps:$4 sm:$0xff]   ;;  %v2329_v30 = vld [vmem:[#allocation5 + $0x444] ss:$16 sps:$4 sm:$0xff]  }
  0x85   :  { %1337 = vmatpush1.bf16.msra.mxu0 %v2237_v31  ;;  %1460 = vmatpush1.bf16.msra.mxu1 %v2240_v32  ;;  %v2332_v31 = vld [vmem:[#allocation5 + $0x44c] ss:$16 sps:$4 sm:$0xff]   ;;  %v2330_v32 = vld [vmem:[#allocation5 + $0x448] ss:$16 sps:$4 sm:$0xff]  }
  0x86   :  { %1338 = vmatprep.subr.bf16.mxu0 %v2245_v33  ;;  %1461 = vmatprep.subr.bf16.mxu1 %v2248_v34  ;;  %v2335_v33 = vld [vmem:[#allocation5 + $0x464] ss:$16 sps:$4 sm:$0xff]   ;;  %v2338_v34 = vld [vmem:[#allocation5 + $0x46c] ss:$16 sps:$4 sm:$0xff]  }
  0x89   :  { %1339 = vmatpush1.bf16.msra.mxu0 %v2243_v35  ;;  %1462 = vmatpush1.bf16.msra.mxu1 %v2246_v36  ;;  %v2333_v35 = vld [vmem:[#allocation5 + $0x460] ss:$16 sps:$4 sm:$0xff]   ;;  %v2336_v36 = vld [vmem:[#allocation5 + $0x468] ss:$16 sps:$4 sm:$0xff]  }
  0x8a   :  { %1340 = vmatprep.subr.bf16.mxu0 %v2251_v37  ;;  %1463 = vmatprep.subr.bf16.mxu1 %v2254_v38  ;;  %v2341_v37 = vld [vmem:[#allocation5 + $0x484] ss:$16 sps:$4 sm:$0xff]   ;;  %v2344_v38 = vld [vmem:[#allocation5 + $0x48c] ss:$16 sps:$4 sm:$0xff]  }
  0x8d   :  { %1341 = vmatpush1.bf16.msra.mxu0 %v2249_v39  ;;  %1464 = vmatpush1.bf16.msra.mxu1 %v2252_v40  ;;  %v2339_v39 = vld [vmem:[#allocation5 + $0x480] ss:$16 sps:$4 sm:$0xff]   ;;  %v2347_v40 = vld [vmem:[#allocation5 + $0x4a4] ss:$16 sps:$4 sm:$0xff]  }
  0x8e   :  { %1342 = vmatprep.subr.bf16.mxu0 %v2257_v41  ;;  %1465 = vmatprep.subr.bf16.mxu1 %v2260_v43  ;;  %v2350_v41 = vld [vmem:[#allocation5 + $0x4ac] ss:$16 sps:$4 sm:$0xff]   ;;  %v2345_v43 = vld [vmem:[#allocation5 + $0x4a0] ss:$16 sps:$4 sm:$0xff]  }
  0x91   :  { %1343 = vmatpush1.bf16.msra.mxu0 %v2255_v44  ;;  %1466 = vmatpush1.bf16.msra.mxu1 %v2258_v45  ;;  %v2348_v44 = vld [vmem:[#allocation5 + $0x4a8] ss:$16 sps:$4 sm:$0xff]   ;;  %v2353_v45 = vld [vmem:[#allocation5 + $0x4c4] ss:$16 sps:$4 sm:$0xff]  }
  0x92   :  { %1344 = vmatprep.subr.bf16.mxu0 %v2263_v46  ;;  %1467 = vmatprep.subr.bf16.mxu1 %v2266_v47  ;;  %v2356_v46 = vld [vmem:[#allocation5 + $0x4cc] ss:$16 sps:$4 sm:$0xff]   ;;  %v2351_v47 = vld [vmem:[#allocation5 + $0x4c0] ss:$16 sps:$4 sm:$0xff]  }
  0x95   :  { %1345 = vmatpush1.bf16.msra.mxu0 %v2261_v48  ;;  %1468 = vmatpush1.bf16.msra.mxu1 %v2264_v49  ;;  %v2354_v48 = vld [vmem:[#allocation5 + $0x4c8] ss:$16 sps:$4 sm:$0xff]   ;;  %v2359_v49 = vld [vmem:[#allocation5 + $0x4e4] ss:$16 sps:$4 sm:$0xff]  }
  0x96   :  { %1346 = vmatprep.subr.bf16.mxu0 %v2269_v50  ;;  %1469 = vmatprep.subr.bf16.mxu1 %v2272_v51  ;;  %v2362_v50 = vld [vmem:[#allocation5 + $0x4ec] ss:$16 sps:$4 sm:$0xff]   ;;  %v2357_v51 = vld [vmem:[#allocation5 + $0x4e0] ss:$16 sps:$4 sm:$0xff]  }
  0x99   :  { %1347 = vmatpush1.bf16.msra.mxu0 %v2267_v52  ;;  %1470 = vmatpush1.bf16.msra.mxu1 %v2270_v53  ;;  %v2360_v52 = vld [vmem:[#allocation5 + $0x4e8] ss:$16 sps:$4 sm:$0xff]   ;;  %v2365_v53 = vld [vmem:[#allocation5 + $0x504] ss:$16 sps:$4 sm:$0xff]  }
  0x9a   :  { %1348 = vmatprep.subr.bf16.mxu0 %v2275_v54  ;;  %1471 = vmatprep.subr.bf16.mxu1 %v2278_v55  ;;  %v2368_v54 = vld [vmem:[#allocation5 + $0x50c] ss:$16 sps:$4 sm:$0xff]   ;;  %v2363_v55 = vld [vmem:[#allocation5 + $0x500] ss:$16 sps:$4 sm:$0xff]  }
  0x9d   :  { %1349 = vmatpush1.bf16.msra.mxu0 %v2273_v56  ;;  %1472 = vmatpush1.bf16.msra.mxu1 %v2276_v57  ;;  %v2366_v56 = vld [vmem:[#allocation5 + $0x508] ss:$16 sps:$4 sm:$0xff]   ;;  %v2371_v57 = vld [vmem:[#allocation5 + $0x524] ss:$16 sps:$4 sm:$0xff]  }
  0x9e   :  { %1350 = vmatprep.subr.bf16.mxu0 %v2281_v58  ;;  %1473 = vmatprep.subr.bf16.mxu1 %v2284_v59  ;;  %v2374_v58 = vld [vmem:[#allocation5 + $0x52c] ss:$16 sps:$4 sm:$0xff]   ;;  %v2369_v59 = vld [vmem:[#allocation5 + $0x520] ss:$16 sps:$4 sm:$0xff]  }
  0xa1   :  { %1351 = vmatpush1.bf16.msra.mxu0 %v2279_v60  ;;  %1474 = vmatpush1.bf16.msra.mxu1 %v2282_v61  ;;  %v2372_v60 = vld [vmem:[#allocation5 + $0x528] ss:$16 sps:$4 sm:$0xff]   ;;  %v2377_v61 = vld [vmem:[#allocation5 + $0x544] ss:$16 sps:$4 sm:$0xff]  }
  0xa2   :  { %1352 = vmatprep.subr.bf16.mxu0 %v2287_v62  ;;  %1475 = vmatprep.subr.bf16.mxu1 %v2290_v63  ;;  %v2380_v62 = vld [vmem:[#allocation5 + $0x54c] ss:$16 sps:$4 sm:$0xff]   ;;  %v2375_v63 = vld [vmem:[#allocation5 + $0x540] ss:$16 sps:$4 sm:$0xff]  }
  0xa5   :  { %1353 = vmatpush1.bf16.msra.mxu0 %v2285_v0  ;;  %1476 = vmatpush1.bf16.msra.mxu1 %v2288_v1  ;;  %v2378_v0 = vld [vmem:[#allocation5 + $0x548] ss:$16 sps:$4 sm:$0xff]   ;;  %v2383_v1 = vld [vmem:[#allocation5 + $0x564] ss:$16 sps:$4 sm:$0xff]  }
  0xa6   :  { %1354 = vmatprep.subr.bf16.mxu0 %v2293_v2  ;;  %1477 = vmatprep.subr.bf16.mxu1 %v2296_v3  ;;  %v2386_v2 = vld [vmem:[#allocation5 + $0x56c] ss:$16 sps:$4 sm:$0xff]   ;;  %v2381_v3 = vld [vmem:[#allocation5 + $0x560] ss:$16 sps:$4 sm:$0xff]  }
  0xa9   :  { %1355 = vmatpush1.bf16.msra.mxu0 %v2291_v4  ;;  %1478 = vmatpush1.bf16.msra.mxu1 %v2294_v5  ;;  %v2384_v4 = vld [vmem:[#allocation5 + $0x568] ss:$16 sps:$4 sm:$0xff]   ;;  %v2389_v5 = vld [vmem:[#allocation5 + $0x584] ss:$16 sps:$4 sm:$0xff]  }
  0xaa   :  { %1356 = vmatprep.subr.bf16.mxu0 %v2299_v6  ;;  %1479 = vmatprep.subr.bf16.mxu1 %v2302_v7  ;;  %v2392_v6 = vld [vmem:[#allocation5 + $0x58c] ss:$16 sps:$4 sm:$0xff]   ;;  %v2387_v7 = vld [vmem:[#allocation5 + $0x580] ss:$16 sps:$4 sm:$0xff]  }
  0xad   :  { %1357 = vmatpush1.bf16.msra.mxu0 %v2297_v8  ;;  %1480 = vmatpush1.bf16.msra.mxu1 %v2300_v9  ;;  %v2390_v8 = vld [vmem:[#allocation5 + $0x588] ss:$16 sps:$4 sm:$0xff]   ;;  %v2395_v9 = vld [vmem:[#allocation5 + $0x5a4] ss:$16 sps:$4 sm:$0xff]  }
  0xae   :  { %1358 = vmatprep.subr.bf16.mxu0 %v2305_v10  ;;  %1481 = vmatprep.subr.bf16.mxu1 %v2308_v11  ;;  %v2398_v10 = vld [vmem:[#allocation5 + $0x5ac] ss:$16 sps:$4 sm:$0xff]   ;;  %v2393_v11 = vld [vmem:[#allocation5 + $0x5a0] ss:$16 sps:$4 sm:$0xff]  }
  0xb1   :  { %1359 = vmatpush1.bf16.msra.mxu0 %v2303_v12  ;;  %1482 = vmatpush1.bf16.msra.mxu1 %v2306_v13  ;;  %v2396_v12 = vld [vmem:[#allocation5 + $0x5a8] ss:$16 sps:$4 sm:$0xff]   ;;  %v2401_v13 = vld [vmem:[#allocation5 + $0x5c4] ss:$16 sps:$4 sm:$0xff]  }
  0xb2   :  { %1360 = vmatprep.subr.bf16.mxu0 %v2311_v14  ;;  %1483 = vmatprep.subr.bf16.mxu1 %v2314_v15  ;;  %v2404_v14 = vld [vmem:[#allocation5 + $0x5cc] ss:$16 sps:$4 sm:$0xff]   ;;  %v2399_v15 = vld [vmem:[#allocation5 + $0x5c0] ss:$16 sps:$4 sm:$0xff]  }
  0xb5   :  { %1361 = vmatpush1.bf16.msra.mxu0 %v2309_v17  ;;  %1484 = vmatpush1.bf16.msra.mxu1 %v2312_v20  ;;  %v2402_v17 = vld [vmem:[#allocation5 + $0x5c8] ss:$16 sps:$4 sm:$0xff]   ;;  %v2407_v20 = vld [vmem:[#allocation5 + $0x5e4] ss:$16 sps:$4 sm:$0xff]  }
  0xb6   :  { %1371 = vmatprep.subr.bf16.mxu0 %v2317_v21  ;;  %1494 = vmatprep.subr.bf16.mxu1 %v2320_v22  ;;  %v2410_v21 = vld [vmem:[#allocation5 + $0x5ec] ss:$16 sps:$4 sm:$0xff]   ;;  %v1555_v22 = vld [vmem:[#allocation7 + $0x80] sm:$0xff] }
  0xb8   :  { %1363 = vmatmul.mubr.bf16.vlgmr.msra.gmra.mrb[0].mxu0 %v321_v23  ;;  %1486 = vmatmul.mubr.bf16.vlgmr.msra.gmra.mrb[0].mxu1 %v321_v23  ;;  %v1556_v23 = vld [vmem:[#allocation7 + $0x88] sm:$0xff] }
  0xb9   :  { %1372 = vmatpush1.bf16.msra.mxu0 %v2315_v24  ;;  %1495 = vmatpush1.bf16.msra.mxu1 %v2318_v25  ;;  %v1587_v24 = vld [vmem:[#allocation7 + $0x180] sm:$0xff]  ;;  %v1588_v25 = vld [vmem:[#allocation7 + $0x188] sm:$0xff] }
  0xba   :  { %1373 = vmatprep.subr.bf16.mxu0 %v2323_v26  ;;  %1496 = vmatprep.subr.bf16.mxu1 %v2326_v27  ;;  %v2405_v26 = vld [vmem:[#allocation5 + $0x5e0] ss:$16 sps:$4 sm:$0xff]   ;;  %v2408_v27 = vld [vmem:[#allocation5 + $0x5e8] ss:$16 sps:$4 sm:$0xff]  }
  0xbb   :  { %1403 = vmatprep.mubr.bf16.mxu0 %v2586_v18  ;;  %1526 = vmatprep.mubr.bf16.mxu1 %v2586_v18  ;;  %v2342_v18 = vld [vmem:[#allocation5 + $0x488] ss:$16 sps:$4 sm:$0xff]  }
  0xbd   :  { %1374 = vmatpush1.bf16.msra.mxu0 %v2321_v28  ;;  %1497 = vmatpush1.bf16.msra.mxu1 %v2324_v29  ;;  %v1539_v28 = vld [vmem:[#allocation7] sm:$0xff]  ;;  %v1540_v29 = vld [vmem:[#allocation7 + $0x8] sm:$0xff] }
  0xbe   :  { %1375 = vmatprep.subr.bf16.mxu0 %v2329_v30  ;;  %1498 = vmatprep.subr.bf16.mxu1 %v2332_v31  ;;  %v2030_v30 = vpack.c.bf16 %v1556_v23, %v1555_v22  ;;  %v2062_v31 = vpack.c.bf16 %v1588_v25, %v1587_v24  ;;  %v1598_v22 = vld [vmem:[#allocation7 + $0x1d8] sm:$0xff]  ;;  %v1549_v25 = vld [vmem:[#allocation7 + $0x50] sm:$0xff] }
  0xc1   :  { %1376 = vmatpush1.bf16.msra.mxu0 %v2327_v16  ;;  %1499 = vmatpush1.bf16.msra.mxu1 %v2330_v32  ;;  %v1571_v16 = vld [vmem:[#allocation7 + $0x100] sm:$0xff]  ;;  %v1572_v32 = vld [vmem:[#allocation7 + $0x108] sm:$0xff] }
  0xc2   :  { %1377 = vmatprep.subr.bf16.mxu0 %v2335_v33  ;;  %1500 = vmatprep.subr.bf16.mxu1 %v2338_v34  ;;  %v1557_v33 = vld [vmem:[#allocation7 + $0x90] sm:$0xff]  ;;  %v1558_v34 = vld [vmem:[#allocation7 + $0x98] sm:$0xff] }
  0xc5   :  { %1378 = vmatpush1.bf16.msra.mxu0 %v2333_v35  ;;  %1501 = vmatpush1.bf16.msra.mxu1 %v2336_v36  ;;  %v1589_v35 = vld [vmem:[#allocation7 + $0x190] sm:$0xff]  ;;  %v1590_v36 = vld [vmem:[#allocation7 + $0x198] sm:$0xff] }
  0xc6   :  { %1379 = vmatprep.subr.bf16.mxu0 %v2341_v37  ;;  %1502 = vmatprep.subr.bf16.mxu1 %v2344_v38  ;;  %v2032_v37 = vpack.c.bf16 %v1540_v29, %v1539_v28  ;;  %v2064_v38 = vpack.c.bf16 %v1572_v32, %v1571_v16  ;;  %v1581_v29 = vld [vmem:[#allocation7 + $0x150] sm:$0xff]  ;;  %v1568_v16 = vld [vmem:[#allocation7 + $0xe8] sm:$0xff]  ;;  %v1599_v32 = vld [vmem:[#allocation7 + $0x1e0] sm:$0xff] }
  0xc9   :  { %1380 = vmatpush1.bf16.msra.mxu0 %v2339_v39  ;;  %1503 = vmatpush1.bf16.msra.mxu1 %v2342_v18  ;;  %v1541_v39 = vld [vmem:[#allocation7 + $0x10] sm:$0xff]  ;;  %v1542_v18 = vld [vmem:[#allocation7 + $0x18] sm:$0xff] }
  0xca   :  { %1381 = vmatprep.subr.bf16.mxu0 %v2347_v40  ;;  %1504 = vmatprep.subr.bf16.mxu1 %v2350_v41  ;;  %v2034_v40 = vpack.c.bf16 %v1558_v34, %v1557_v33  ;;  %v2066_v41 = vpack.c.bf16 %v1590_v36, %v1589_v35  ;;  %v1600_v33 = vld [vmem:[#allocation7 + $0x1e8] sm:$0xff] }
  0xcd   :  { %1382 = vmatpush1.bf16.msra.mxu0 %v2345_v43  ;;  %1505 = vmatpush1.bf16.msra.mxu1 %v2348_v44  ;;  %v1573_v43 = vld [vmem:[#allocation7 + $0x110] sm:$0xff]  ;;  %v1574_v44 = vld [vmem:[#allocation7 + $0x118] sm:$0xff] }
  0xce   :  { %1383 = vmatprep.subr.bf16.mxu0 %v2353_v45  ;;  %1506 = vmatprep.subr.bf16.mxu1 %v2356_v46  ;;  %v1559_v45 = vld [vmem:[#allocation7 + $0xa0] sm:$0xff]  ;;  %v1560_v46 = vld [vmem:[#allocation7 + $0xa8] sm:$0xff] }
  0xd1   :  { %1384 = vmatpush1.bf16.msra.mxu0 %v2351_v47  ;;  %1507 = vmatpush1.bf16.msra.mxu1 %v2354_v48  ;;  %v1591_v47 = vld [vmem:[#allocation7 + $0x1a0] sm:$0xff]  ;;  %v1592_v48 = vld [vmem:[#allocation7 + $0x1a8] sm:$0xff] }
  0xd2   :  { %1385 = vmatprep.subr.bf16.mxu0 %v2359_v49  ;;  %1508 = vmatprep.subr.bf16.mxu1 %v2362_v50  ;;  %v2036_v49 = vpack.c.bf16 %v1542_v18, %v1541_v39  ;;  %v2068_v50 = vpack.c.bf16 %v1574_v44, %v1573_v43  ;;  %v1552_v39 = vld [vmem:[#allocation7 + $0x68] sm:$0xff]  ;;  %v1583_v18 = vld [vmem:[#allocation7 + $0x160] sm:$0xff]  ;;  %v1569_v44 = vld [vmem:[#allocation7 + $0xf0] sm:$0xff] }
  0xd5   :  { %1386 = vmatpush1.bf16.msra.mxu0 %v2357_v51  ;;  %1509 = vmatpush1.bf16.msra.mxu1 %v2360_v52  ;;  %v1543_v51 = vld [vmem:[#allocation7 + $0x20] sm:$0xff]  ;;  %v1544_v52 = vld [vmem:[#allocation7 + $0x28] sm:$0xff] }
  0xd6   :  { %1387 = vmatprep.subr.bf16.mxu0 %v2365_v53  ;;  %1510 = vmatprep.subr.bf16.mxu1 %v2368_v54  ;;  %v2038_v53 = vpack.c.bf16 %v1560_v46, %v1559_v45  ;;  %v2070_v54 = vpack.c.bf16 %v1592_v48, %v1591_v47  ;;  %v1570_v45 = vld [vmem:[#allocation7 + $0xf8] sm:$0xff]  ;;  %v1601_v46 = vld [vmem:[#allocation7 + $0x1f0] sm:$0xff] }
  0xd7   :  { %v2058_v47 = vpack.c.bf16 %v1570_v45, %v1569_v44  ;;  %v1602_v48 = vld [vmem:[#allocation7 + $0x1f8] sm:$0xff] }
  0xd9   :  { %1388 = vmatpush1.bf16.msra.mxu0 %v2363_v55  ;;  %1511 = vmatpush1.bf16.msra.mxu1 %v2366_v56  ;;  %v1575_v55 = vld [vmem:[#allocation7 + $0x120] sm:$0xff]  ;;  %v1576_v56 = vld [vmem:[#allocation7 + $0x128] sm:$0xff] }
  0xda   :  { %1389 = vmatprep.subr.bf16.mxu0 %v2371_v57  ;;  %1512 = vmatprep.subr.bf16.mxu1 %v2374_v58  ;;  %v1561_v57 = vld [vmem:[#allocation7 + $0xb0] sm:$0xff]  ;;  %v1562_v58 = vld [vmem:[#allocation7 + $0xb8] sm:$0xff] }
  0xdd   :  { %1390 = vmatpush1.bf16.msra.mxu0 %v2369_v59  ;;  %1513 = vmatpush1.bf16.msra.mxu1 %v2372_v60  ;;  %v1593_v59 = vld [vmem:[#allocation7 + $0x1b0] sm:$0xff]  ;;  %v1594_v60 = vld [vmem:[#allocation7 + $0x1b8] sm:$0xff] }
  0xde   :  { %1391 = vmatprep.subr.bf16.mxu0 %v2377_v61  ;;  %1514 = vmatprep.subr.bf16.mxu1 %v2380_v62  ;;  %v2040_v61 = vpack.c.bf16 %v1544_v52, %v1543_v51  ;;  %v1545_v62 = vld [vmem:[#allocation7 + $0x30] sm:$0xff]  ;;  %v2090_v51 = vpack.c.bf16 %v1602_v48, %v1601_v46 }
  0xe1   :  { %1392 = vmatpush1.bf16.msra.mxu0 %v2375_v63  ;;  %1515 = vmatpush1.bf16.msra.mxu1 %v2378_v0  ;;  %v1546_v63 = vld [vmem:[#allocation7 + $0x38] sm:$0xff]  ;;  %v2042_v0 = vpack.c.bf16 %v1562_v58, %v1561_v57  ;;  %v265_v57 = vsub.s32 2, %v2581_v42 }
  0xe2   :  { %1393 = vmatprep.subr.bf16.mxu0 %v2383_v1  ;;  %1516 = vmatprep.subr.bf16.mxu1 %v2386_v2  ;;  %v2074_v1 = vpack.c.bf16 %v1594_v60, %v1593_v59  ;;  %v1577_v2 = vld [vmem:[#allocation7 + $0x130] sm:$0xff]  ;;  %v253_v58 = vld [vmem:[%s2622_s2] sm:$0xf]  ;;  %v261_v59 = vsub.s32 1, %v2581_v42  ;;  %v269_v60 = vsub.s32 3, %v2581_v42 }
  0xe5   :  { %1394 = vmatpush1.bf16.msra.mxu0 %v2381_v3  ;;  %1517 = vmatpush1.bf16.msra.mxu1 %v2384_v4  ;;  %v1578_v3 = vld [vmem:[#allocation7 + $0x138] sm:$0xff]  ;;  %v1563_v4 = vld [vmem:[#allocation7 + $0xc0] sm:$0xff] }
  0xe6   :  { %1395 = vmatprep.subr.bf16.mxu0 %v2389_v5  ;;  %1518 = vmatprep.subr.bf16.mxu1 %v2392_v6  ;;  %v1564_v5 = vld [vmem:[#allocation7 + $0xc8] sm:$0xff]  ;;  %v1595_v6 = vld [vmem:[#allocation7 + $0x1c0] sm:$0xff] }
  0xe9   :  { %1396 = vmatpush1.bf16.msra.mxu0 %v2387_v7  ;;  %1519 = vmatpush1.bf16.msra.mxu1 %v2390_v8  ;;  %v1596_v7 = vld [vmem:[#allocation7 + $0x1c8] sm:$0xff]  ;;  %v2044_v8 = vpack.c.bf16 %v1546_v63, %v1545_v62  ;;  %v262_v62 = vrot.slane %v253_v58, %v261_v59  ;;  %v270_v63 = vrot.slane %v253_v58, %v269_v60 }
  0xea   :  { %1397 = vmatprep.subr.bf16.mxu0 %v2395_v9  ;;  %1520 = vmatprep.subr.bf16.mxu1 %v2398_v10  ;;  %v2076_v9 = vpack.c.bf16 %v1578_v3, %v1577_v2  ;;  %v1547_v10 = vld [vmem:[#allocation7 + $0x40] sm:$0xff] }
  0xed   :  { %1398 = vmatpush1.bf16.msra.mxu0 %v2393_v11  ;;  %1521 = vmatpush1.bf16.msra.mxu1 %v2396_v12  ;;  %v1548_v11 = vld [vmem:[#allocation7 + $0x48] sm:$0xff]  ;;  %v2046_v12 = vpack.c.bf16 %v1564_v5, %v1563_v4 }
  0xee   :  { %1399 = vmatprep.subr.bf16.mxu0 %v2401_v13  ;;  %1522 = vmatprep.subr.bf16.mxu1 %v2404_v14  ;;  %v2078_v13 = vpack.c.bf16 %v1596_v7, %v1595_v6  ;;  %v1579_v14 = vld [vmem:[#allocation7 + $0x140] sm:$0xff]  ;;  %v2048_v23 = vpack.c.bf16 %v1548_v11, %v1547_v10 }
  0xf1   :  { %1400 = vmatpush1.bf16.msra.mxu0 %v2399_v15  ;;  %1523 = vmatpush1.bf16.msra.mxu1 %v2402_v17  ;;  %v1580_v15 = vld [vmem:[#allocation7 + $0x148] sm:$0xff]  ;;  %v1565_v17 = vld [vmem:[#allocation7 + $0xd0] sm:$0xff] }
  0xf2   :  { %1401 = vmatprep.subr.bf16.mxu0 %v2407_v20  ;;  %1524 = vmatprep.subr.bf16.mxu1 %v2410_v21  ;;  %v1566_v20 = vld [vmem:[#allocation7 + $0xd8] sm:$0xff]  ;;  %v1597_v21 = vld [vmem:[#allocation7 + $0x1d0] sm:$0xff]  ;;  %v2080_v24 = vpack.c.bf16 %v1580_v15, %v1579_v14 }
  0xf3   :  { %v2082_v28 = vpack.c.bf16 %v1598_v22, %v1597_v21 }
  0xf5   :  { %1402 = vmatpush1.bf16.msra.mxu0 %v2405_v26  ;;  %1525 = vmatpush1.bf16.msra.mxu1 %v2408_v27  ;;  %v1550_v26 = vld [vmem:[#allocation7 + $0x58] sm:$0xff]  ;;  %v2050_v27 = vpack.c.bf16 %v1566_v20, %v1565_v17 }
  0xf6   :  { %2031 = vmatprep.subr.bf16.mxu0 %v2030_v30  ;;  %2063 = vmatprep.subr.bf16.mxu1 %v2062_v31  ;;  %v1582_v30 = vld [vmem:[#allocation7 + $0x158] sm:$0xff]  ;;  %v1567_v31 = vld [vmem:[#allocation7 + $0xe0] sm:$0xff]  ;;  %v2052_v34 = vpack.c.bf16 %v1550_v26, %v1549_v25 }
  0xf7   :  { %v2084_v35 = vpack.c.bf16 %v1582_v30, %v1581_v29  ;;  %v2054_v36 = vpack.c.bf16 %v1568_v16, %v1567_v31  ;;  %v1959_v20 = vld [vmem:[%s2624_s4] ss:$0 sm:$0xff] }
  0xf8   :  { %1404 = vmatmul.mubr.bf16.vlgmr.msra.gmra.mrb[0].mxu0 %v2588_v19  ;;  %1527 = vmatmul.mubr.bf16.vlgmr.msra.gmra.mrb[0].mxu1 %v2588_v19  ;;  %v2072_v19 = vpack.c.bf16 %v1576_v56, %v1575_v55  ;;  %v257_v56 = vsub.s32 0, %v2581_v42 }
  0xf9   :  { %2033 = vmatpush3.bf16.msra.mxu0 %v2032_v37  ;;  %2065 = vmatpush3.bf16.msra.mxu1 %v2064_v38  ;;  %v2086_v37 = vpack.c.bf16 %v1600_v33, %v1599_v32  ;;  %v1551_v38 = vld [vmem:[#allocation7 + $0x60] sm:$0xff] }
  0xfa   :  { %2035 = vmatprep.subr.bf16.mxu0 %v2034_v40  ;;  %2067 = vmatprep.subr.bf16.mxu1 %v2066_v41  ;;  %v2056_v40 = vpack.c.bf16 %v1552_v39, %v1551_v38  ;;  %v1584_v41 = vld [vmem:[#allocation7 + $0x168] sm:$0xff] }
  0xfb   :  { %v2088_v43 = vpack.c.bf16 %v1584_v41, %v1583_v18 }
  0xfd   :  { %2037 = vmatpush3.bf16.msra.mxu0 %v2036_v49  ;;  %2069 = vmatpush3.bf16.msra.mxu1 %v2068_v50  ;;  %v1553_v49 = vld [vmem:[#allocation7 + $0x70] sm:$0xff]  ;;  %v1554_v50 = vld [vmem:[#allocation7 + $0x78] sm:$0xff] }
  0xfe   :  { %2039 = vmatprep.subr.bf16.mxu0 %v2038_v53  ;;  %2071 = vmatprep.subr.bf16.mxu1 %v2070_v54  ;;  %v2060_v52 = vpack.c.bf16 %v1554_v50, %v1553_v49  ;;  %v1585_v53 = vld [vmem:[#allocation7 + $0x170] sm:$0xff]  ;;  %v1586_v54 = vld [vmem:[#allocation7 + $0x178] sm:$0xff] }
  0xff   :  { %v2092_v55 = vpack.c.bf16 %v1586_v54, %v1585_v53 }
 0x101   :  { %2041 = vmatpush3.bf16.msra.mxu0 %v2040_v61  ;;  %2073 = vmatpush3.bf16.msra.mxu1 %v2072_v19  ;;  %v258_v61 = vrot.slane %v253_v58, %v257_v56  ;;  %v266_v19 = vrot.slane %v253_v58, %v265_v57 }
 0x102   :  { %2043 = vmatprep.subr.bf16.mxu0 %v2042_v0  ;;  %2075 = vmatprep.subr.bf16.mxu1 %v2074_v1 }
 0x105   :  { %2045 = vmatpush3.bf16.msra.mxu0 %v2044_v8  ;;  %2077 = vmatpush3.bf16.msra.mxu1 %v2076_v9 }
 0x106   :  { %2047 = vmatprep.subr.bf16.mxu0 %v2046_v12  ;;  %2079 = vmatprep.subr.bf16.mxu1 %v2078_v13 }
 0x109   :  { %2049 = vmatpush3.bf16.msra.mxu0 %v2048_v23  ;;  %2081 = vmatpush3.bf16.msra.mxu1 %v2080_v24 }
 0x10a   :  { %2051 = vmatprep.subr.bf16.mxu0 %v2050_v27  ;;  %2083 = vmatprep.subr.bf16.mxu1 %v2082_v28 }
 0x10d   :  { %2053 = vmatpush3.bf16.msra.mxu0 %v2052_v34  ;;  %2085 = vmatpush3.bf16.msra.mxu1 %v2084_v35 }
 0x10e   :  { %2055 = vmatprep.subr.bf16.mxu0 %v2054_v36  ;;  %2087 = vmatprep.subr.bf16.mxu1 %v2086_v37 }
 0x111   :  { %2057 = vmatpush3.bf16.msra.mxu0 %v2056_v40  ;;  %2089 = vmatpush3.bf16.msra.mxu1 %v2088_v43 }
 0x112   :  { %2059 = vmatprep.subr.bf16.mxu0 %v2058_v47  ;;  %2091 = vmatprep.subr.bf16.mxu1 %v2090_v51 }
 0x115   :  { %2061 = vmatpush3.bf16.msra.mxu0 %v2060_v52  ;;  %2093 = vmatpush3.bf16.msra.mxu1 %v2092_v55 }
 0x1cb   :  { %v1405_v0 = vpop.f32.mrb[0].mxu0  ;;  %v1528_v1 = vpop.f32.mrb[0].mxu1 }
 0x1cc   :  { %v2094_v2 = vadd.f32 %v1405_v0, %v258_v61  ;;  %v2096_v3 = vadd.f32 %v1528_v1, %v266_v19  ;;  %v1407_v4 = vpop.f32.mrb[1].mxu0  ;;  %v1530_v5 = vpop.f32.mrb[1].mxu1 }
 0x1cd   :  { %v2095_v6 = vadd.f32 %v1407_v4, %v262_v62  ;;  %v2097_v7 = vadd.f32 %v1530_v5, %v270_v63  ;;  %v1409_v8 = vpop.f32.mrb[2].mxu0  ;;  %v1532_v9 = vpop.f32.mrb[2].mxu1 }
 0x1ce   :  { %v1410_v10 = vpop.f32.mrb[3].mxu0  ;;  %v1533_v11 = vpop.f32.mrb[3].mxu1  ;;  %v1535_v14 = vmax.f32 %v2094_v2, 0.0  ;;  %v1537_v42 = vmax.f32 %v2096_v3, 0.0 }
 0x1cf   :  { %v1536_v12 = vmax.f32 %v2095_v6, 0.0  ;;  %v1538_v13 = vmax.f32 %v2097_v7, 0.0 }
 0x1d1   :  { %1674 = vmatprep.mubr.f32.mxu0 %v1536_v12  ;;  %1744 = vmatprep.mubr.f32.mxu1 %v1538_v13 }
 0x1d2   :  { %1675 = vmatmul.mubr.f32.vlgmr.msra.gmra.mrb[4].mxu0 %v1535_v14  ;;  %1745 = vmatmul.mubr.f32.vlgmr.msra.gmra.mrb[4].mxu1 %v1537_v42 }
 0x2a5   :  { %v1992_v15 = vpop.f32.mrb[4].mxu0  ;;  %v2027_v17 = vpop.f32.mrb[4].mxu1 }
 0x2a6   :  { %v1993_v21 = vpop.f32.mrb[5].mxu0  ;;  %v2028_v22 = vpop.f32.mrb[5].mxu1 }
 0x2a7   :  { %v1994_v23 = vadd.f32 %v1993_v21, %v1992_v15  ;;  %v2029_v24 = vadd.f32 %v2028_v22, %v2027_v17 }
 0x2a9   :  { %v1677_v25 = vadd.f32 %v1994_v23, %v1959_v20 }
 0x2ab   :  { %v1747_v26 = vadd.f32 %v2029_v24, %v1677_v25 }
 0x2ad   :  { %1750 = vst [vmem:[#allocation8] sm:$0x3] %v1747_v26 }
 0x2ae   :  { %2489 = shalt.err (!%p2486_p0)
}
 0x2af   :  { %s2490_s4 = scalar_lea.hbm %s2625_s5, 32 }
 0x2b0   :  { %p2491_p1 = scmp.ne.s32.totalorder %s2625_s5, %s2490_s4  ;;  %p2494_p2 = scmp.lt.u32.totalorder %s2490_s4, %s2625_s5 }
 0x2b2   :  { %p2496_p3 = pnand %p2494_p2, %p2491_p1 }
 0x2b4   :  { %2499 = shalt.err (!%p2496_p3)
}
 0x2b5   :  { %1760 = dma.vmem_to_hbm [thread:$0]  %s1758_s9, 32, %s2625_s5, [#allocation4]  }
 0x2b6   :  { %2504 = dma.done.wait [#allocation4], 32  }
 0x2b7   :  { %2505 = vsyncadd [#allocation4], 4294967264 }
 0x2b8   :  { %1764 = vsyncpa [#allocation3], 1 }
 0x2b9   :  { %1765 = vsyncpa [#allocation6], 1 }
 0x2ba   :  { %1766 = vsyncpa [#allocation4], 1 }

</bundles_post_ra>
